<compile_context>
chip_gen: v7x
topology: tpu7x:2x2x1
jax: 0.10.0
libtpu: 0.0.40
codegen_flags: <defaults>
</compile_context>

<pallas_src>
import functools

import jax
import jax.numpy as jnp
import numpy as np
from jax.experimental import pallas as pl
from jax.experimental.pallas import tpu as pltpu

# PyTorch nn.LSTMCell gate row order.
GATE_I, GATE_F, GATE_G, GATE_O = 0, 1, 2, 3
LANE = 128


def _round_up(x, m):
    return (x + m - 1) // m * m


# ----------------------------------------------------------------------------
# Parameter packing (done ONCE at init; weight-only).
# ----------------------------------------------------------------------------
def _gate_cols(W, H, gate):
    # W: (4H, K) torch layout -> (K, H) slab for one gate.
    return W[gate * H:(gate + 1) * H, :].T


def _fuse_dirs(Wf, Wb, H, P):
    """(4H, K) per direction -> (K, 3P) fused, lane-padded gate slab.

    Column layout (each block 128-aligned, P = round_up(2H, 128)):
      [ i_f i_b 0.. | o_f o_b 0.. | g_f g_b 0.. ]
    The forget gate is dropped: it only multiplies c_prev, which is
    identically zero for this module.
    """
    K = Wf.shape[1]
    pad = jnp.zeros((K, P - 2 * H), Wf.dtype)

    def pair(gate):
        return jnp.concatenate(
            [_gate_cols(Wf, H, gate), _gate_cols(Wb, H, gate), pad], axis=1)

    return jnp.concatenate([pair(GATE_I), pair(GATE_O), pair(GATE_G)], axis=1)


def _fuse_bias(bf, bb, H, P):
    pad = jnp.zeros((P - 2 * H,), bf.dtype)

    def pair(gate):
        return jnp.concatenate(
            [bf[gate * H:(gate + 1) * H], bb[gate * H:(gate + 1) * H], pad])

    return jnp.concatenate([pair(GATE_I), pair(GATE_O), pair(GATE_G)])


def pack_params(params_f, params_b, x_dim, H, compute_dtype=jnp.bfloat16):
    """Pack both directions' LSTMCell params into kernel-ready slabs.

    Returns [W0r, (Wh,), bias]:
      W0r  : (in_dim, L*Gp)      column block 0 = layer-0 input weights,
                                 block l>=1 = zero-padded read weights of layer l.
      Wh   : (L-1, P, Gp)        per-layer weights acting on [h_f | h_b | 0..].
      bias : (L, 1, Gp) float32  fused b_ih + b_hh (padded lanes are 0).
    W_hh is dropped (zero hidden state); the backward direction's
    torch.flip(x, [1]) is absorbed as a column flip of its weights
    ( flip(x) @ W.T == x @ flip(W, 1).T ).
    """
    L = len(params_f)
    P = _round_up(2 * H, LANE)
    Gp = 3 * P
    in_dim = params_f[0][0].shape[1]

    # --- layer 0: acts on the full x_combined = [x | reads] ----------------
    Wf0, _, bf_ih0, bf_hh0 = params_f[0]
    Wb0, _, bb_ih0, bb_hh0 = params_b[0]
    W0 = _fuse_dirs(Wf0, Wb0[:, ::-1], H, P)                     # (in_dim, Gp)
    biases = [_fuse_bias(bf_ih0 + bf_hh0, bb_ih0 + bb_hh0, H, P)]

    # --- layers >= 1: input is cat([h_dir, reads]) (flipped for backward) --
    Wh_list, Wr_list = [], []
    for l in range(1, L):
        Wf, _, bf_ih, bf_hh = params_f[l]
        Wb, _, bb_ih, bb_hh = params_b[l]
        Wb = Wb[:, ::-1]                       # absorb flip(cat([h_b, reads]))
        zero = jnp.zeros((4 * H, H), Wf.dtype)
        Wh_l = jnp.concatenate(
            [_fuse_dirs(Wf[:, :H], zero, H, P),         # rows for h_f
             _fuse_dirs(zero, Wb[:, :H], H, P),         # rows for h_b
             jnp.zeros((P - 2 * H, Gp), Wf.dtype)],     # padded-lane rows
            axis=0)                                     # (P, Gp)
        Wh_list.append(Wh_l)
        Wr_list.append(_fuse_dirs(Wf[:, H:], Wb[:, H:], H, P))    # (R, Gp)
        biases.append(_fuse_bias(bf_ih + bf_hh, bb_ih + bb_hh, H, P))

    if L > 1:
        Wr_all = jnp.concatenate(Wr_list, axis=1)                 # (R,(L-1)Gp)
        Wr_pad = jnp.concatenate(
            [jnp.zeros((x_dim, (L - 1) * Gp), W0.dtype), Wr_all], axis=0)
        W0r = jnp.concatenate([W0, Wr_pad], axis=1)               # (in_dim,L*Gp)
        Wh = jnp.stack(Wh_list)                                   # (L-1, P, Gp)
        packed = [W0r.astype(compute_dtype), Wh.astype(compute_dtype)]
    else:
        packed = [W0.astype(compute_dtype)]
    bias = jnp.stack(biases).reshape(L, 1, Gp).astype(jnp.float32)
    packed.append(bias)
    return packed


# ----------------------------------------------------------------------------
# Pallas kernel
# ----------------------------------------------------------------------------
def make_controller_kernel(num_layers: int, ctrl_dim: int, compute_dtype):
    H = ctrl_dim
    P = _round_up(2 * H, LANE)
    Gp = 3 * P

    def activate(gates):
        # gates: (M, Gp) with 128-aligned blocks [i | o | g]; padded lanes
        # carry 0 -> sigmoid(0)*tanh(0) keeps them 0 in h/c.
        i_blk = jax.nn.sigmoid(gates[:, :P])
        o_blk = jax.nn.sigmoid(gates[:, P:2 * P])
        g_blk = jnp.tanh(gates[:, 2 * P:])
        c_blk = i_blk * g_blk                 # c = i * g   (c_prev == 0)
        h_blk = o_blk * jnp.tanh(c_blk)       # h = o * tanh(c)
        return h_blk, c_blk                   # each (M, P) = [h_f|h_b|0..]

    def kernel(*refs):
        if num_layers > 1:
            x_ref, w0r_ref, wh_ref, b_ref, out_ref = refs
        else:
            x_ref, w0r_ref, b_ref, out_ref = refs

        # One MXU pass covers layer-0's input term AND every layer's read term.
        inp = jnp.dot(x_ref[0], w0r_ref[...],
                      preferred_element_type=jnp.float32)         # (M, L*Gp) f32

        h_blk, c_blk = activate(inp[:, :Gp] + b_ref[0])
        h_sum, c_sum = h_blk, c_blk
        for l in range(1, num_layers):
            gates = (jnp.dot(h_blk.astype(compute_dtype), wh_ref[l - 1],
                             preferred_element_type=jnp.float32)
                     + inp[:, l * Gp:(l + 1) * Gp] + b_ref[l])
            h_blk, c_blk = activate(gates)
            h_sum = h_sum + h_blk
            c_sum = c_sum + c_blk

        inv_L = jnp.float32(1.0 / num_layers)
        # Both halves are P-wide (multiple of 128) -> the concat offset is
        # lane-aligned and the write is one unmasked lane-dense store.
        out_ref[0] = jnp.concatenate([h_sum, c_sum], axis=1) * inv_L

    return kernel


# ----------------------------------------------------------------------------
# Wrappers calling pallas_call
# ----------------------------------------------------------------------------
@functools.partial(jax.jit, static_argnames=("num_layers", "ctrl_dim"))
def controller_steps_pallas(xs_comb, packed, *, num_layers, ctrl_dim):
    """Run T independent controller forward() steps in a single pallas_call.

    xs_comb : (T, B, in_dim)  pre-concatenated [x | prev_reads] per step.
    packed  : output of pack_params (computed once at init).
    Returns (avg_h, avg_c), each (T, B, 2*ctrl_dim) float32.
    """
    T, B, in_dim = xs_comb.shape
    H = ctrl_dim
    P = _round_up(2 * H, LANE)
    compute_dtype = packed[0].dtype
    Mb = _round_up(max(B, 8), 8)           # fill at least the 8 vreg sublanes

    x = xs_comb.astype(compute_dtype)
    if Mb != B:
        x = jnp.pad(x, ((0, 0), (0, Mb - B), (0, 0)))

    kernel = make_controller_kernel(num_layers, H, compute_dtype)

    # Weight slabs use constant index_maps -> they stay VMEM-resident across
    # the whole step grid (no per-step weight re-DMA).
    in_specs = [pl.BlockSpec((1, Mb, in_dim), lambda t: (t, 0, 0)),
                pl.BlockSpec(packed[0].shape, lambda t: (0, 0))]
    if num_layers > 1:
        in_specs.append(pl.BlockSpec(packed[1].shape, lambda t: (0, 0, 0)))
    in_specs.append(pl.BlockSpec(packed[-1].shape, lambda t: (0, 0, 0)))

    out = pl.pallas_call(
        kernel,
        grid=(T,),
        in_specs=in_specs,
        out_specs=pl.BlockSpec((1, Mb, 2 * P), lambda t: (t, 0, 0)),
        out_shape=jax.ShapeDtypeStruct((T, Mb, 2 * P), jnp.float32),
        compiler_params=pltpu.CompilerParams(
            # Steps are independent (zero initial state on every call), so the
            # step axis is 'parallel' -> megacore sharding on v7x.
            dimension_semantics=("parallel",),
            # Tiny here; at production sizes raise this on v6e, and on v7x
            # stream Wh per layer (64 MiB physical VMEM) instead.
            vmem_limit_bytes=32 * 1024 * 1024),
    )(*([x] + list(packed)))

    avg_h = out[:, :B, :2 * H]
    avg_c = out[:, :B, P:P + 2 * H]
    return avg_h, avg_c


def controller_forward_pallas(x, prev_reads, packed, num_layers, ctrl_dim):
    """Single module forward() step."""
    x_comb = jnp.concatenate([x] + list(prev_reads), axis=1)[None]  # (1,B,in)
    h, c = controller_steps_pallas(x_comb, packed,
                                   num_layers=num_layers, ctrl_dim=ctrl_dim)
    return h[0], c[0]


def controller_forward_sequence_pallas(xs, prev_reads_seq, packed,
                                       num_layers, ctrl_dim):
    """T forward() steps fused into one kernel launch."""
    xs_comb = jnp.concatenate([xs] + list(prev_reads_seq), axis=2)  # (T,B,in)
    return controller_steps_pallas(xs_comb, packed,
                                   num_layers=num_layers, ctrl_dim=ctrl_dim)


# ----------------------------------------------------------------------------
# Parameter init (PyTorch-style uniform(-1/sqrt(H), 1/sqrt(H)))
# ----------------------------------------------------------------------------
def init_lstm_cell(key, in_dim, H):
    k1, k2, k3, k4 = jax.random.split(key, 4)
    bound = 1.0 / np.sqrt(H)
    u = functools.partial(jax.random.uniform, minval=-bound, maxval=bound,
                          dtype=jnp.float32)
    W_ih = u(k1, (4 * H, in_dim))
    W_hh = u(k2, (4 * H, H))
    b_ih = u(k3, (4 * H,))
    b_hh = u(k4, (4 * H,))
    return W_ih, W_hh, b_ih, b_hh


# ----------------------------------------------------------------------------
# Pure-JAX reference (mirrors the PyTorch module exactly, full f32)
# ----------------------------------------------------------------------------
def lstm_cell_ref(x, h, c, W_ih, W_hh, b_ih, b_hh):
    gates = x @ W_ih.T + b_ih + h @ W_hh.T + b_hh
    i, f, g, o = jnp.split(gates, 4, axis=1)
    i = jax.nn.sigmoid(i)
    f = jax.nn.sigmoid(f)
    g = jnp.tanh(g)
    o = jax.nn.sigmoid(o)
    c_n = f * c + i * g
    h_n = o * jnp.tanh(c_n)
    return h_n, c_n


def controller_forward_ref(x, prev_reads, params_f, params_b, num_layers, H):
    B = x.shape[0]
    x_comb = jnp.concatenate([x] + list(prev_reads), axis=1)

    def run(params, backward):
        xi = x_comb
        hs, cs = [], []
        for l in range(num_layers):
            if backward:
                xi = xi[:, ::-1]
            W_ih, W_hh, b_ih, b_hh = params[l]
            h, c = lstm_cell_ref(xi, jnp.zeros((B, H)), jnp.zeros((B, H)),
                                 W_ih, W_hh, b_ih, b_hh)
            xi = jnp.concatenate([h] + list(prev_reads), axis=1)
            hs.append(h)
            cs.append(c)
        return hs, cs

    hf, cf = run(params_f, False)
    hb, cb = run(params_b, True)
    h_states = [jnp.concatenate([a, b], axis=1) for a, b in zip(hf, hb)]
    c_states = [jnp.concatenate([a, b], axis=1) for a, b in zip(cf, cb)]
    return (jnp.mean(jnp.stack(h_states), axis=0),
            jnp.mean(jnp.stack(c_states), axis=0))


# ----------------------------------------------------------------------------
if __name__ == "__main__":
    B = 2
    X_DIM = 16
    READ_DIM = 16
    CTRL_DIM = 32
    INPUT_DIM = X_DIM + READ_DIM          # LSTMCell(input_dim, ctrl_dim) @ layer 0
    READ_DATA_DIM = CTRL_DIM + READ_DIM   # LSTMCell(read_data_dim, ctrl_dim) @ layer>0
    NUM_LAYERS = 2
    T = 4                                 # fused controller steps for the seq test

    key = jax.random.PRNGKey(0)
    keys = jax.random.split(key, 4 + 2 * NUM_LAYERS)
    x = jax.random.normal(keys[0], (B, X_DIM), jnp.float32)
    prev_reads = [jax.random.normal(keys[1], (B, READ_DIM), jnp.float32)]
    xs_seq = jax.random.normal(keys[2], (T, B, X_DIM), jnp.float32)
    reads_seq = [jax.random.normal(keys[3], (T, B, READ_DIM), jnp.float32)]

    params_f, params_b = [], []
    for l in range(NUM_LAYERS):
        in_dim = INPUT_DIM if l == 0 else READ_DATA_DIM
        params_f.append(init_lstm_cell(keys[4 + l], in_dim, CTRL_DIM))
        params_b.append(init_lstm_cell(keys[4 + NUM_LAYERS + l], in_dim, CTRL_DIM))

    # Packing hoisted out of the per-call path: done once here, reused below.
    packed_f32 = pack_params(params_f, params_b, X_DIM, CTRL_DIM, jnp.float32)
    packed_bf16 = pack_params(params_f, params_b, X_DIM, CTRL_DIM, jnp.bfloat16)

    # ---- single step (module forward) -------------------------------------
    ref_h, ref_c = controller_forward_ref(
        x, prev_reads, params_f, params_b, NUM_LAYERS, CTRL_DIM)

    # f32 path (preferred on v5e): tight check against the f32 reference.
    h32, c32 = controller_forward_pallas(
        x, prev_reads, packed_f32, NUM_LAYERS, CTRL_DIM)
    h32 = jax.block_until_ready(h32)
    c32 = jax.block_until_ready(c32)
    assert h32.shape == (B, 2 * CTRL_DIM) and c32.shape == (B, 2 * CTRL_DIM)
    np.testing.assert_allclose(np.asarray(h32), np.asarray(ref_h),
                               rtol=1e-4, atol=1e-4)
    np.testing.assert_allclose(np.asarray(c32), np.asarray(ref_c),
                               rtol=1e-4, atol=1e-4)

    # bf16-weight path (v6e/v7x preferred): looser tolerance vs f32 reference.
    h16, c16 = controller_forward_pallas(
        x, prev_reads, packed_bf16, NUM_LAYERS, CTRL_DIM)
    h16 = jax.block_until_ready(h16)
    c16 = jax.block_until_ready(c16)
    np.testing.assert_allclose(np.asarray(h16), np.asarray(ref_h),
                               rtol=2e-2, atol=2e-2)
    np.testing.assert_allclose(np.asarray(c16), np.asarray(ref_c),
                               rtol=2e-2, atol=2e-2)

    # ---- T steps fused into one pallas_call (grid over the step axis) ------
    hs, cs = controller_forward_sequence_pallas(
        xs_seq, reads_seq, packed_f32, NUM_LAYERS, CTRL_DIM)
    hs = jax.block_until_ready(hs)
    cs = jax.block_until_ready(cs)
    ref_hs, ref_cs = [], []
    for t in range(T):
        rh, rc = controller_forward_ref(
            xs_seq[t], [r[t] for r in reads_seq],
            params_f, params_b, NUM_LAYERS, CTRL_DIM)
        ref_hs.append(rh)
        ref_cs.append(rc)
    np.testing.assert_allclose(np.asarray(hs), np.asarray(jnp.stack(ref_hs)),
                               rtol=1e-4, atol=1e-4)
    np.testing.assert_allclose(np.asarray(cs), np.asarray(jnp.stack(ref_cs)),
                               rtol=1e-4, atol=1e-4)

    print("KERNEL_OK")
</pallas_src>

<mosaic_0001>
module attributes {stable_mosaic.version = 11 : i64} {
  func.func @kernel(%arg0: i32, %arg1: memref<1x8x32xf32, #tpu.memory_space<vmem>>, %arg2: memref<32x768xf32, #tpu.memory_space<vmem>>, %arg3: memref<1x128x384xf32, #tpu.memory_space<vmem>>, %arg4: memref<2x1x384xf32, #tpu.memory_space<vmem>>, %arg5: memref<1x8x256xf32, #tpu.memory_space<vmem>>) attributes {dimension_semantics = [#tpu.dimension_semantics<parallel>], iteration_bounds = array<i64: 1>, scalar_prefetch = 0 : i64, scratch_operands = 0 : i64, tpu.core_type = #tpu.core_type<tc>, window_params = [{transform_indices = @transform_0, window_bounds = array<i64: 1, 8, 32>}, {pipeline_mode = #tpu.pipeline_mode<synchronous>, transform_indices = @transform_1, window_bounds = array<i64: 32, 768>}, {pipeline_mode = #tpu.pipeline_mode<synchronous>, transform_indices = @transform_2, window_bounds = array<i64: 1, 128, 384>}, {pipeline_mode = #tpu.pipeline_mode<synchronous>, transform_indices = @transform_3, window_bounds = array<i64: 2, 1, 384>}, {transform_indices = @transform_4, window_bounds = array<i64: 1, 8, 256>}]} {
    %c0 = arith.constant 0 : index
    %c0_0 = arith.constant 0 : index
    %c0_1 = arith.constant 0 : index
    %0 = vector.load %arg1[%c0, %c0_0, %c0_1] : memref<1x8x32xf32, #tpu.memory_space<vmem>>, vector<1x8x32xf32>
    %1 = vector.shape_cast %0 : vector<1x8x32xf32> to vector<8x32xf32>
    %c0_2 = arith.constant 0 : index
    %c0_3 = arith.constant 0 : index
    %2 = vector.load %arg2[%c0_2, %c0_3] : memref<32x768xf32, #tpu.memory_space<vmem>>, vector<32x768xf32>
    %cst = arith.constant dense<0.000000e+00> : vector<8x768xf32>
    %3 = tpu.matmul %1, %2, %cst {dimension_numbers = #tpu.dot_dimension_numbers<[1], [0], [0], [1], [0, 0, 1, 1], [], []>} : vector<8x32xf32>, vector<32x768xf32>, vector<8x768xf32> -> vector<8x768xf32>
    %4 = vector.extract_strided_slice %3 {offsets = [0, 0], sizes = [8, 384], strides = [1, 1]} : vector<8x768xf32> to vector<8x384xf32>
    %c0_4 = arith.constant 0 : index
    %c0_5 = arith.constant 0 : index
    %c0_6 = arith.constant 0 : index
    %5 = vector.load %arg4[%c0_4, %c0_5, %c0_6] : memref<2x1x384xf32, #tpu.memory_space<vmem>>, vector<1x1x384xf32>
    %6 = vector.shape_cast %5 : vector<1x1x384xf32> to vector<1x384xf32>
    %7 = vector.broadcast %6 : vector<1x384xf32> to vector<8x384xf32>
    %8 = arith.addf %4, %7 : vector<8x384xf32>
    %9 = vector.extract_strided_slice %8 {offsets = [0, 0], sizes = [8, 128], strides = [1, 1]} : vector<8x384xf32> to vector<8x128xf32>
    %10 = arith.negf %9 : vector<8x128xf32>
    %11 = math.exp %10 : vector<8x128xf32>
    %cst_7 = arith.constant 1.000000e+00 : f32
    %12 = vector.broadcast %cst_7 : f32 to vector<8x128xf32>
    %13 = arith.addf %12, %11 : vector<8x128xf32>
    %14 = arith.divf %12, %13 : vector<8x128xf32>
    %15 = vector.extract_strided_slice %8 {offsets = [0, 128], sizes = [8, 128], strides = [1, 1]} : vector<8x384xf32> to vector<8x128xf32>
    %16 = arith.negf %15 : vector<8x128xf32>
    %17 = math.exp %16 : vector<8x128xf32>
    %cst_8 = arith.constant 1.000000e+00 : f32
    %18 = vector.broadcast %cst_8 : f32 to vector<8x128xf32>
    %19 = arith.addf %18, %17 : vector<8x128xf32>
    %20 = arith.divf %18, %19 : vector<8x128xf32>
    %21 = vector.extract_strided_slice %8 {offsets = [0, 256], sizes = [8, 128], strides = [1, 1]} : vector<8x384xf32> to vector<8x128xf32>
    %22 = math.tanh %21 : vector<8x128xf32>
    %23 = arith.mulf %14, %22 : vector<8x128xf32>
    %24 = math.tanh %23 : vector<8x128xf32>
    %25 = arith.mulf %20, %24 : vector<8x128xf32>
    %c0_9 = arith.constant 0 : index
    %c0_10 = arith.constant 0 : index
    %c0_11 = arith.constant 0 : index
    %26 = vector.load %arg3[%c0_9, %c0_10, %c0_11] : memref<1x128x384xf32, #tpu.memory_space<vmem>>, vector<1x128x384xf32>
    %27 = vector.shape_cast %26 : vector<1x128x384xf32> to vector<128x384xf32>
    %cst_12 = arith.constant dense<0.000000e+00> : vector<8x384xf32>
    %28 = tpu.matmul %25, %27, %cst_12 {dimension_numbers = #tpu.dot_dimension_numbers<[1], [0], [0], [1], [0, 0, 1, 1], [], []>} : vector<8x128xf32>, vector<128x384xf32>, vector<8x384xf32> -> vector<8x384xf32>
    %29 = vector.extract_strided_slice %3 {offsets = [0, 384], sizes = [8, 384], strides = [1, 1]} : vector<8x768xf32> to vector<8x384xf32>
    %30 = arith.addf %28, %29 : vector<8x384xf32>
    %c1 = arith.constant 1 : index
    %c0_13 = arith.constant 0 : index
    %c0_14 = arith.constant 0 : index
    %31 = vector.load %arg4[%c1, %c0_13, %c0_14] : memref<2x1x384xf32, #tpu.memory_space<vmem>>, vector<1x1x384xf32>
    %32 = vector.shape_cast %31 : vector<1x1x384xf32> to vector<1x384xf32>
    %33 = vector.broadcast %32 : vector<1x384xf32> to vector<8x384xf32>
    %34 = arith.addf %30, %33 : vector<8x384xf32>
    %35 = vector.extract_strided_slice %34 {offsets = [0, 0], sizes = [8, 128], strides = [1, 1]} : vector<8x384xf32> to vector<8x128xf32>
    %36 = arith.negf %35 : vector<8x128xf32>
    %37 = math.exp %36 : vector<8x128xf32>
    %cst_15 = arith.constant 1.000000e+00 : f32
    %38 = vector.broadcast %cst_15 : f32 to vector<8x128xf32>
    %39 = arith.addf %38, %37 : vector<8x128xf32>
    %40 = arith.divf %38, %39 : vector<8x128xf32>
    %41 = vector.extract_strided_slice %34 {offsets = [0, 128], sizes = [8, 128], strides = [1, 1]} : vector<8x384xf32> to vector<8x128xf32>
    %42 = arith.negf %41 : vector<8x128xf32>
    %43 = math.exp %42 : vector<8x128xf32>
    %cst_16 = arith.constant 1.000000e+00 : f32
    %44 = vector.broadcast %cst_16 : f32 to vector<8x128xf32>
    %45 = arith.addf %44, %43 : vector<8x128xf32>
    %46 = arith.divf %44, %45 : vector<8x128xf32>
    %47 = vector.extract_strided_slice %34 {offsets = [0, 256], sizes = [8, 128], strides = [1, 1]} : vector<8x384xf32> to vector<8x128xf32>
    %48 = math.tanh %47 : vector<8x128xf32>
    %49 = arith.mulf %40, %48 : vector<8x128xf32>
    %50 = math.tanh %49 : vector<8x128xf32>
    %51 = arith.mulf %46, %50 : vector<8x128xf32>
    %52 = arith.addf %25, %51 : vector<8x128xf32>
    %53 = arith.addf %23, %49 : vector<8x128xf32>
    %54 = tpu.concatenate %52, %53 in 1 : vector<8x128xf32>, vector<8x128xf32> -> vector<8x256xf32>
    %cst_17 = arith.constant 5.000000e-01 : f32
    %55 = vector.broadcast %cst_17 : f32 to vector<8x256xf32>
    %56 = arith.mulf %54, %55 : vector<8x256xf32>
    %c0_18 = arith.constant 0 : index
    %c0_19 = arith.constant 0 : index
    %c0_20 = arith.constant 0 : index
    %57 = vector.load %arg5[%c0_18, %c0_19, %c0_20] : memref<1x8x256xf32, #tpu.memory_space<vmem>>, vector<1x8x256xf32>
    %58 = vector.shape_cast %57 : vector<1x8x256xf32> to vector<8x256xf32>
    %59 = vector.shape_cast %56 : vector<8x256xf32> to vector<1x8x256xf32>
    tpu.vector_store %arg5[%c0_18, %c0_19, %c0_20], %59 {strides = array<i32>} : memref<1x8x256xf32, #tpu.memory_space<vmem>>, vector<1x8x256xf32>,
    return
  }
  func.func @transform_0(%arg0: i32) -> (i32, i32, i32) {
    %c0_i32 = arith.constant 0 : i32
    %c0_i32_0 = arith.constant 0 : i32
    %c0_i32_1 = arith.constant 0 : i32
    return %arg0, %c0_i32, %c0_i32_0 : i32, i32, i32
  }
  func.func @transform_1(%arg0: i32) -> (i32, i32) {
    %c0_i32 = arith.constant 0 : i32
    %c0_i32_0 = arith.constant 0 : i32
    %c0_i32_1 = arith.constant 0 : i32
    return %c0_i32, %c0_i32_0 : i32, i32
  }
  func.func @transform_2(%arg0: i32) -> (i32, i32, i32) {
    %c0_i32 = arith.constant 0 : i32
    %c0_i32_0 = arith.constant 0 : i32
    %c0_i32_1 = arith.constant 0 : i32
    %c0_i32_2 = arith.constant 0 : i32
    return %c0_i32, %c0_i32_0, %c0_i32_1 : i32, i32, i32
  }
  func.func @transform_3(%arg0: i32) -> (i32, i32, i32) {
    %c0_i32 = arith.constant 0 : i32
    %c0_i32_0 = arith.constant 0 : i32
    %c0_i32_1 = arith.constant 0 : i32
    %c0_i32_2 = arith.constant 0 : i32
    return %c0_i32, %c0_i32_0, %c0_i32_1 : i32, i32, i32
  }
  func.func @transform_4(%arg0: i32) -> (i32, i32, i32) {
    %c0_i32 = arith.constant 0 : i32
    %c0_i32_0 = arith.constant 0 : i32
    %c0_i32_1 = arith.constant 0 : i32
    return %arg0, %c0_i32, %c0_i32_0 : i32, i32, i32
  }
}

</mosaic_0001>

<bundles_post_ra>
// kernel: controller_steps_pallas.1
= control target key start
LH: loop header
LB: loop body
LE: loop exit
PB: predicated region body
PF: predicated region fallthrough
CT: control target
= control target key end

     0   :  { %9 = vsyncpa [#allocation3], 0  ;;  %s871_s0 = inlined_call_operand.vmem [shape: f32[1,8,32], index: 0, kind: input, shape index: {}]   ;;  %s872_s1 = inlined_call_operand.hbm [shape: f32[32,768], index: 1, kind: input, shape index: {}]   ;;  %s873_s2 = inlined_call_operand.hbm [shape: f32[1,128,384], index: 2, kind: input, shape index: {}]   ;;  %s874_s3 = inlined_call_operand.vmem [shape: f32[2,1,384], index: 3, kind: input, shape index: {}]   ;;  %s875_s4 = inlined_call_operand.vmem [shape: f32[1,8,256], index: 4, kind: output, shape index: {}]  }
   0x1   :  { %10 = vsyncpa [#allocation5], 0  ;;  %s782_s15 = smov [#allocation2]   ;;  %s734_s19 = scalar_lea.hbm %s872_s1, 3072 }
   0x2   :  { %s18_s16 = sshll.u32 %s782_s15, 4  ;;  %p735_p0 = scmp.ne.s32.totalorder %s872_s1, %s734_s19  ;;  %s19_s16 = int_to_ptr.vmem [resolvable:$true] %s18_s16 }
   0x3   :  { %p738_p1 = scmp.lt.u32.totalorder %s734_s19, %s872_s1 }
   0x5   :  { %p740_p2 = pnand %p738_p1, %p735_p0 }
   0x7   :  { %743 = shalt.err (!%p740_p2)
}
   0x8   :  { %s744_s24 = scalar_lea.vmem %s19_s16, 3072  ;;  %p749_p4 = scmp.lt.s32.totalorder %s19_s16, %s19_s16 }
   0x9   :  { %p745_p3 = scmp.ne.s32.totalorder %s19_s16, %s744_s24  ;;  %p750_p5 = scmp.lt.s32.totalorder %s744_s24, %s744_s24 }
   0xb   :  { %p751_p6 = por %p750_p5, %p749_p4 }
   0xd   :  { %p752_p7 = pnand %p751_p6, %p745_p3 }
   0xf   :  { %755 = shalt.err (!%p752_p7)
}
  0x10   :  { %s783_s25 = smov 768   ;;  %s784_s26 = smov 48  }
  0x11   :  { %24 = dma.hbm_to_vmem [thread:$0]  %s872_s1, 3072, %s19_s16, [#allocation3], %s783_s25, %s783_s25, %s784_s26  }
  0x12   :  { %s785_s29 = smov [#allocation4]   ;;  %s756_s7 = scalar_lea.hbm %s873_s2, 6144 }
  0x13   :  { %s30_s30 = sshll.u32 %s785_s29, 4  ;;  %p757_p8 = scmp.ne.s32.totalorder %s873_s2, %s756_s7  ;;  %s31_s30 = int_to_ptr.vmem [resolvable:$true] %s30_s30 }
  0x14   :  { %p760_p9 = scmp.lt.u32.totalorder %s756_s7, %s873_s2 }
  0x16   :  { %p762_p10 = pnand %p760_p9, %p757_p8 }
  0x18   :  { %765 = shalt.err (!%p762_p10)
}
  0x19   :  { %s766_s12 = scalar_lea.vmem %s31_s30, 6144  ;;  %p771_p12 = scmp.lt.s32.totalorder %s31_s30, %s31_s30 }
  0x1a   :  { %p767_p11 = scmp.ne.s32.totalorder %s31_s30, %s766_s12  ;;  %p772_p13 = scmp.lt.s32.totalorder %s766_s12, %s766_s12 }
  0x1c   :  { %p773_p0 = por %p772_p13, %p771_p12 }
  0x1e   :  { %p774_p1 = pnand %p773_p0, %p767_p11 }
  0x20   :  { %777 = shalt.err (!%p774_p1)
}
  0x21   :  { %s786_s1 = smov 384   ;;  %s787_s13 = smov 24  }
  0x22   :  { %36 = dma.hbm_to_vmem [thread:$0]  %s873_s2, 6144, %s31_s30, [#allocation5], %s786_s1, %s786_s1, %s787_s13  }
  0x23   :  { %778 = dma.done.wait [#allocation3], 3072  }
  0x24   :  { %779 = vsyncadd [#allocation3], 4294964224 }
  0x25   :  { %780 = dma.done.wait [#allocation5], 6144  }
  0x26   :  { %781 = vsyncadd [#allocation5], 4294961152  ;;  %v788_v0 = vmov 0.0   ;;  %v47_v1 = vld [vmem:[#allocation2 + $0x8] sm:$0xff]  ;;  %v53_v2 = vld [vmem:[#allocation2 + $0x38] sm:$0xff]  ;;  %vm70_vm0 = vcmask 261120  }
  0x27   :  { %138 = vmatprep.mubr.f32.mxu0 %v788_v0  ;;  %209 = vmatprep.mubr.f32.mxu1 %v788_v0  ;;  %v46_v3 = vld [vmem:[#allocation2] sm:$0xff]  ;;  %v621_v4 = vpack.c.bf16 %v53_v2, %v47_v1  ;;  %v52_v5 = vld [vmem:[#allocation2 + $0x30] sm:$0xff]  ;;  %v59_v6 = vld [vmem:[#allocation2 + $0x68] sm:$0xff]  ;;  %v789_v46 = vmov 0.0|0.0   ;;  %vm790_vm1 = vmmov 0  }
  0x28   :  { %v65_v7 = vld [vmem:[#allocation2 + $0x98] sm:$0xff]  ;;  %v623_v8 = vpack.c.bf16 %v52_v5, %v46_v3  ;;  %v58_v10 = vld [vmem:[#allocation2 + $0x60] sm:$0xff]  ;;  %v64_v11 = vld [vmem:[#allocation2 + $0x90] sm:$0xff] }
  0x29   :  { %v625_v9 = vpack.c.bf16 %v65_v7, %v59_v6  ;;  %622 = vmatprep.subr.bf16.mxu0 %v621_v4  ;;  %v49_v12 = vld [vmem:[#allocation2 + $0x18] sm:$0xff]  ;;  %v55_v13 = vld [vmem:[#allocation2 + $0x48] sm:$0xff]  ;;  %v48_v14 = vld [vmem:[#allocation2 + $0x10] sm:$0xff]  ;;  %v627_v15 = vpack.c.bf16 %v64_v11, %v58_v10 }
  0x2a   :  { %624 = vmatpush1.bf16.msra.mxu0 %v623_v8  ;;  %v629_v16 = vpack.c.bf16 %v55_v13, %v49_v12  ;;  %v54_v17 = vld [vmem:[#allocation2 + $0x40] sm:$0xff]  ;;  %v61_v18 = vld [vmem:[#allocation2 + $0x78] sm:$0xff]  ;;  %v67_v19 = vld [vmem:[#allocation2 + $0xa8] sm:$0xff] }
  0x2b   :  { %626 = vmatprep.subr.bf16.mxu0 %v625_v9  ;;  %v631_v20 = vpack.c.bf16 %v54_v17, %v48_v14  ;;  %v633_v21 = vpack.c.bf16 %v67_v19, %v61_v18  ;;  %v60_v22 = vld [vmem:[#allocation2 + $0x70] sm:$0xff]  ;;  %v66_v23 = vld [vmem:[#allocation2 + $0xa0] sm:$0xff]  ;;  %v51_v26 = vld [vmem:[#allocation2 + $0x28] sm:$0xff] }
  0x2c   :  { %630 = vmatprep.subr.bf16.mxu1 %v629_v16  ;;  %v635_v24 = vpack.c.bf16 %v66_v23, %v60_v22  ;;  %v45_v25 = vld [vmem:[%s871_s0] sm:$0xff]  ;;  %v57_v27 = vld [vmem:[#allocation2 + $0x58] sm:$0xff]  ;;  %v56_v30 = vld [vmem:[#allocation2 + $0x50] sm:$0xff] }
  0x2d   :  { %632 = vmatpush1.bf16.msra.mxu1 %v631_v20  ;;  %v637_v28 = vpack.c.bf16 %v57_v27, %v51_v26  ;;  %v50_v29 = vld [vmem:[#allocation2 + $0x20] sm:$0xff]  ;;  %v63_v32 = vld [vmem:[#allocation2 + $0x88] sm:$0xff]  ;;  %v69_v33 = vld [vmem:[#allocation2 + $0xb8] sm:$0xff] }
  0x2e   :  { %628 = vmatpush1.bf16.msra.mxu0 %v627_v15  ;;  %634 = vmatprep.subr.bf16.mxu1 %v633_v21  ;;  %v639_v31 = vpack.c.bf16 %v56_v30, %v50_v29  ;;  %v641_v34 = vpack.c.bf16 %v69_v33, %v63_v32  ;;  %v62_v35 = vld [vmem:[#allocation2 + $0x80] sm:$0xff]  ;;  %v68_v36 = vld [vmem:[#allocation2 + $0xb0] sm:$0xff]  ;;  %v324_v38 = vld [vmem:[#allocation4 + $0x8] sm:$0xff] }
  0x2f   :  { %638 = vmatprep.subr.bf16.mxu0 %v637_v28  ;;  %v643_v37 = vpack.c.bf16 %v68_v36, %v62_v35  ;;  %v327_v39 = vld [vmem:[#allocation4 + $0x20] sm:$0xff]  ;;  %v326_v42 = vld [vmem:[#allocation4 + $0x18] sm:$0xff]  ;;  %v325_v43 = vld [vmem:[#allocation4 + $0x10] sm:$0xff] }
  0x30   :  { %v645_v40 = vpack.c.bf16 %v327_v39, %v324_v38  ;;  %v323_v41 = vld [vmem:[#allocation4] sm:$0xff]  ;;  %v328_v45 = vld [vmem:[#allocation4 + $0x28] sm:$0xff]  ;;  %v330_v48 = vld [vmem:[#allocation4 + $0x38] sm:$0xff] }
  0x31   :  { %561 = vmatmul.mubr.msk.f32.vlgmr.msra.gmra.mrb[0].mxu0 %vm70_vm0, %v45_v25  ;;  %636 = vmatpush1.bf16.msra.mxu1 %v635_v24  ;;  %v647_v44 = vpack.c.bf16 %v326_v42, %v323_v41  ;;  %v678_v47 = vpack.c.bf16 %v328_v45, %v325_v43  ;;  %v333_v49 = vld [vmem:[#allocation4 + $0x50] sm:$0xff]  ;;  %v332_v52 = vld [vmem:[#allocation4 + $0x48] sm:$0xff]  ;;  %v331_v53 = vld [vmem:[#allocation4 + $0x40] sm:$0xff] }
  0x32   :  { %280 = vmatprep.mubr.f32.mxu0 %v788_v0  ;;  %640 = vmatpush1.bf16.msra.mxu0 %v639_v31  ;;  %v649_v50 = vpack.c.bf16 %v333_v49, %v330_v48  ;;  %v329_v51 = vld [vmem:[#allocation4 + $0x30] sm:$0xff]  ;;  %v334_v55 = vld [vmem:[#allocation4 + $0x58] sm:$0xff]  ;;  %v336_v57 = vld [vmem:[#allocation4 + $0x68] sm:$0xff]  ;;  %v289_v48 = vlaneseq }
  0x33   :  { %642 = vmatprep.subr.bf16.mxu0 %v641_v34  ;;  %646 = vmatprep.subr.bf16.mxu1 %v645_v40  ;;  %v651_v54 = vpack.c.bf16 %v332_v52, %v329_v51  ;;  %v681_v56 = vpack.c.bf16 %v334_v55, %v331_v53  ;;  %v339_v58 = vld [vmem:[#allocation4 + $0x80] sm:$0xff]  ;;  %v338_v61 = vld [vmem:[#allocation4 + $0x78] sm:$0xff]  ;;  %v337_v62 = vld [vmem:[#allocation4 + $0x70] sm:$0xff] }
  0x34   :  { %562 = vmatmul.mubr.msk.f32.vlgmr.msra.gmra.mrb[0].mxu1 %vm70_vm0, %v45_v25  ;;  %v653_v59 = vpack.c.bf16 %v339_v58, %v336_v57  ;;  %v335_v60 = vld [vmem:[#allocation4 + $0x60] sm:$0xff]  ;;  %v340_v1 = vld [vmem:[#allocation4 + $0x88] sm:$0xff]  ;;  %v342_v3 = vld [vmem:[#allocation4 + $0x98] sm:$0xff]  ;;  %v290_v49 = vshrl.u32 %v289_v48, 7 }
  0x35   :  { %435 = vmatprep.mubr.f32.mxu1 %v788_v0  ;;  %648 = vmatpush1.bf16.msra.mxu1 %v647_v44  ;;  %v655_v63 = vpack.c.bf16 %v338_v61, %v335_v60  ;;  %v684_v2 = vpack.c.bf16 %v340_v1, %v337_v62  ;;  %v345_v4 = vld [vmem:[#allocation4 + $0xb0] sm:$0xff]  ;;  %v344_v7 = vld [vmem:[#allocation4 + $0xa8] sm:$0xff]  ;;  %v343_v8 = vld [vmem:[#allocation4 + $0xa0] sm:$0xff] }
  0x36   :  { %644 = vmatpush1.bf16.msra.mxu0 %v643_v37  ;;  %650 = vmatprep.subr.bf16.mxu1 %v649_v50  ;;  %v657_v5 = vpack.c.bf16 %v345_v4, %v342_v3  ;;  %v341_v6 = vld [vmem:[#allocation4 + $0x90] sm:$0xff]  ;;  %v346_v10 = vld [vmem:[#allocation4 + $0xb8] sm:$0xff]  ;;  %v348_v12 = vld [vmem:[#allocation4 + $0xc8] sm:$0xff]  ;;  %v291_v50 = vsub.s32 0, %v290_v49  ;;  %v295_v53 = vsub.s32 1, %v290_v49  ;;  %v299_v60 = vsub.s32 2, %v290_v49 }
  0x37   :  { %677 = vmatprep.subr.bf16.mxu0 %v789_v46  ;;  %v659_v9 = vpack.c.bf16 %v344_v7, %v341_v6  ;;  %v687_v11 = vpack.c.bf16 %v346_v10, %v343_v8  ;;  %v351_v13 = vld [vmem:[#allocation4 + $0xe0] sm:$0xff]  ;;  %v350_v16 = vld [vmem:[#allocation4 + $0xd8] sm:$0xff]  ;;  %v349_v17 = vld [vmem:[#allocation4 + $0xd0] sm:$0xff] }
  0x38   :  { %v661_v14 = vpack.c.bf16 %v351_v13, %v348_v12  ;;  %v347_v15 = vld [vmem:[#allocation4 + $0xc0] sm:$0xff]  ;;  %v352_v19 = vld [vmem:[#allocation4 + $0xe8] sm:$0xff]  ;;  %v354_v21 = vld [vmem:[#allocation4 + $0xf8] sm:$0xff] }
  0x39   :  { %563 = vmatmul.mubr.msk.f32.vlgmr.msra.gmra.mrb[2].mxu0 %vm70_vm0, %v45_v25  ;;  %652 = vmatpush1.bf16.msra.mxu1 %v651_v54  ;;  %v663_v18 = vpack.c.bf16 %v350_v16, %v347_v15  ;;  %v690_v20 = vpack.c.bf16 %v352_v19, %v349_v17  ;;  %v357_v22 = vld [vmem:[#allocation4 + $0x110] sm:$0xff]  ;;  %v356_v25 = vld [vmem:[#allocation4 + $0x108] sm:$0xff]  ;;  %v355_v26 = vld [vmem:[#allocation4 + $0x100] sm:$0xff] }
  0x3a   :  { %679 = vmatpush3.bf16.msra.mxu0 %v678_v47  ;;  %654 = vmatprep.subr.bf16.mxu1 %v653_v59  ;;  %v665_v23 = vpack.c.bf16 %v357_v22, %v354_v21  ;;  %v353_v24 = vld [vmem:[#allocation4 + $0xf0] sm:$0xff]  ;;  %v358_v28 = vld [vmem:[#allocation4 + $0x118] sm:$0xff]  ;;  %v360_v29 = vld [vmem:[#allocation4 + $0x128] sm:$0xff] }
  0x3b   :  { %680 = vmatprep.subr.bf16.mxu0 %v789_v46  ;;  %v667_v27 = vpack.c.bf16 %v356_v25, %v353_v24  ;;  %v363_v30 = vld [vmem:[#allocation4 + $0x140] sm:$0xff]  ;;  %v693_v31 = vpack.c.bf16 %v358_v28, %v355_v26  ;;  %v362_v34 = vld [vmem:[#allocation4 + $0x138] sm:$0xff]  ;;  %v361_v35 = vld [vmem:[#allocation4 + $0x130] sm:$0xff]  ;;  %618 = vmatprep.mubr.msk.f32.mxu0 %vm790_vm1, %v788_v0 }
  0x3c   :  { %v669_v32 = vpack.c.bf16 %v363_v30, %v360_v29  ;;  %v359_v33 = vld [vmem:[#allocation4 + $0x120] sm:$0xff]  ;;  %v364_v37 = vld [vmem:[#allocation4 + $0x148] sm:$0xff]  ;;  %v366_v38 = vld [vmem:[#allocation4 + $0x158] sm:$0xff] }
  0x3d   :  { %656 = vmatpush1.bf16.msra.mxu1 %v655_v63  ;;  %v671_v36 = vpack.c.bf16 %v362_v34, %v359_v33  ;;  %v369_v39 = vld [vmem:[#allocation4 + $0x170] sm:$0xff]  ;;  %v696_v40 = vpack.c.bf16 %v364_v37, %v361_v35  ;;  %v368_v43 = vld [vmem:[#allocation4 + $0x168] sm:$0xff]  ;;  %v367_v44 = vld [vmem:[#allocation4 + $0x160] sm:$0xff] }
  0x3e   :  { %682 = vmatpush3.bf16.msra.mxu0 %v681_v56  ;;  %658 = vmatprep.subr.bf16.mxu1 %v657_v5  ;;  %v673_v41 = vpack.c.bf16 %v369_v39, %v366_v38  ;;  %v365_v42 = vld [vmem:[#allocation4 + $0x150] sm:$0xff]  ;;  %v370_v45 = vld [vmem:[#allocation4 + $0x178] sm:$0xff]  ;;  %v287_v51 = vld [vmem:[%s874_s3] sm:$0x7] }
  0x3f   :  { %683 = vmatprep.subr.bf16.mxu0 %v789_v46  ;;  %v675_v47 = vpack.c.bf16 %v368_v43, %v365_v42  ;;  %v699_v0 = vpack.c.bf16 %v370_v45, %v367_v44  ;;  %v292_v52 = vrot.slane %v287_v51, %v291_v50  ;;  %v296_v57 = vrot.slane %v287_v51, %v295_v53 }
  0x40   :  { %v300_v62 = vrot.slane %v287_v51, %v299_v60 }
  0x41   :  { %660 = vmatpush1.bf16.msra.mxu1 %v659_v9 }
  0x42   :  { %685 = vmatpush3.bf16.msra.mxu0 %v684_v2  ;;  %662 = vmatprep.subr.bf16.mxu1 %v661_v14  ;;  %v566_v14 = vld [vmem:[%s874_s3 + $0x3] sm:$0x7] }
  0x43   :  { %686 = vmatprep.subr.bf16.mxu0 %v789_v46  ;;  %v518_v15 = vrot.slane %v566_v14, %v291_v50  ;;  %v522_v24 = vrot.slane %v566_v14, %v295_v53 }
  0x45   :  { %664 = vmatpush1.bf16.msra.mxu1 %v663_v18 }
  0x46   :  { %688 = vmatpush3.bf16.msra.mxu0 %v687_v11  ;;  %666 = vmatprep.subr.bf16.mxu1 %v665_v23 }
  0x47   :  { %689 = vmatprep.subr.bf16.mxu0 %v789_v46 }
  0x49   :  { %668 = vmatpush1.bf16.msra.mxu1 %v667_v27  ;;  %v526_v27 = vrot.slane %v566_v14, %v299_v60 }
  0x4a   :  { %691 = vmatpush3.bf16.msra.mxu0 %v690_v20  ;;  %670 = vmatprep.subr.bf16.mxu1 %v669_v32 }
  0x4b   :  { %692 = vmatprep.subr.bf16.mxu0 %v789_v46 }
  0x4d   :  { %672 = vmatpush1.bf16.msra.mxu1 %v671_v36 }
  0x4e   :  { %694 = vmatpush3.bf16.msra.mxu0 %v693_v31  ;;  %674 = vmatprep.subr.bf16.mxu1 %v673_v41 }
  0x4f   :  { %695 = vmatprep.subr.bf16.mxu0 %v789_v46 }
  0x51   :  { %676 = vmatpush1.bf16.msra.mxu1 %v675_v47 }
  0x52   :  { %697 = vmatpush3.bf16.msra.mxu0 %v696_v40 }
  0x53   :  { %698 = vmatprep.subr.bf16.mxu0 %v789_v46 }
  0x56   :  { %700 = vmatpush3.bf16.msra.mxu0 %v699_v0 }
 0x104   :  { %v140_v54 = vpop.f32.mrb[0].mxu0 }
 0x105   :  { %v304_v55 = vadd.f32 %v292_v52, %v140_v54  ;;  %v142_v56 = vpop.f32.mrb[1].mxu0 }
 0x106   :  { %v305_v46 = vadd.f32 %v296_v57, %v142_v56 }
 0x107   :  { %v564_v58 = vmul.f32 -1.442695, %v304_v55  ;;  %v211_v59 = vpop.f32.mrb[0].mxu1 }
 0x108   :  { %v213_v61 = vpop.f32.mrb[1].mxu1  ;;  %v565_v63 = vmul.f32 -1.442695, %v305_v46  ;;  %v306_v1 = vadd.f32 %v300_v62, %v211_v59 }
 0x109   :  { %710 = vpow2.f32 %v564_v58 }
 0x10a   :  { %712 = vpow2.f32 %v565_v63 }
 0x10b   :  { %714 = vtanh.f32 %v306_v1 }
 0x10c   :  { %v282_v12 = vpop.f32.mrb[2].mxu0 }
 0x10d   :  { %v284_v13 = vpop.f32.mrb[3].mxu0 }
 0x113   :  { %v711_v2 = vpop.eup %710 }
 0x114   :  { %v310_v3 = vadd.f32 1.0, %v711_v2  ;;  %v713_v4 = vpop.eup %712 }
 0x115   :  { %v715_v5 = vpop.eup %714  ;;  %v316_v6 = vadd.f32 1.0, %v713_v4 }
 0x116   :  { %716 = vrcp.f32 %v310_v3 }
 0x117   :  { %718 = vrcp.f32 %v316_v6 }
 0x120   :  { %v717_v7 = vpop.eup %716 }
 0x121   :  { %v320_v8 = vmul.f32 %v717_v7, %v715_v5  ;;  %v719_v9 = vpop.eup %718 }
 0x123   :  { %720 = vtanh.f32 %v320_v8 }
 0x12d   :  { %v721_v10 = vpop.eup %720 }
 0x12e   :  { %v322_v11 = vmul.f32 %v721_v10, %v719_v9 }
 0x130   :  { %436 = vmatmul.mubr.f32.vlgmr.msra.gmra.mrb[2].mxu1 %v322_v11  ;;  %619 = vmatmul.mubr.f32.vlgmr.msra.gmra.mrb[4].mxu0 %v322_v11 }
 0x203   :  { %v437_v16 = vpop.f32.mrb[2].mxu1  ;;  %v508_v17 = vpop.f32.mrb[4].mxu0 }
 0x204   :  { %v438_v18 = vadd.f32 %v437_v16, %v213_v61  ;;  %v509_v19 = vadd.f32 %v508_v17, %v284_v13  ;;  %v439_v20 = vpop.f32.mrb[3].mxu1  ;;  %v620_v21 = vpop.f32.mrb[5].mxu0 }
 0x205   :  { %v440_v22 = vadd.f32 %v439_v20, %v282_v12 }
 0x206   :  { %v530_v23 = vadd.f32 %v518_v15, %v438_v18  ;;  %v532_v29 = vadd.f32 %v526_v27, %v509_v19 }
 0x207   :  { %v531_v26 = vadd.f32 %v522_v24, %v440_v22 }
 0x208   :  { %v567_v25 = vmul.f32 -1.442695, %v530_v23 }
 0x209   :  { %v568_v28 = vmul.f32 -1.442695, %v531_v26 }
 0x20a   :  { %722 = vpow2.f32 %v567_v25 }
 0x20b   :  { %724 = vpow2.f32 %v568_v28 }
 0x20c   :  { %726 = vtanh.f32 %v532_v29 }
 0x214   :  { %v723_v30 = vpop.eup %722 }
 0x215   :  { %v536_v31 = vadd.f32 1.0, %v723_v30  ;;  %v725_v32 = vpop.eup %724 }
 0x216   :  { %v542_v33 = vadd.f32 1.0, %v725_v32  ;;  %v727_v34 = vpop.eup %726 }
 0x217   :  { %728 = vrcp.f32 %v536_v31 }
 0x218   :  { %730 = vrcp.f32 %v542_v33 }
 0x221   :  { %v729_v35 = vpop.eup %728 }
 0x222   :  { %v546_v36 = vmul.f32 %v729_v35, %v727_v34  ;;  %v731_v39 = vpop.eup %730 }
 0x224   :  { %732 = vtanh.f32 %v546_v36  ;;  %v550_v37 = vadd.f32 %v546_v36, %v320_v8 }
 0x226   :  { %v552_v38 = vmul.f32 0.5, %v550_v37 }
 0x228   :  { %554 = vst [vmem:[%s875_s4 + $0x8] sm:$0xff] %v552_v38 }
 0x22e   :  { %v733_v40 = vpop.eup %732 }
 0x22f   :  { %v548_v41 = vmul.f32 %v733_v40, %v731_v39 }
 0x231   :  { %v549_v42 = vadd.f32 %v548_v41, %v322_v11 }
 0x233   :  { %v551_v43 = vmul.f32 0.5, %v549_v42 }
 0x235   :  { %553 = vst [vmem:[%s875_s4] sm:$0xff] %v551_v43 }
 0x236   :  { %559 = vsyncpa [#allocation3], 1 }
 0x237   :  { %560 = vsyncpa [#allocation5], 1 }

</bundles_post_ra>
